<compile_context>
chip_gen: v7x
topology: tpu7x:2x2x1
jax: 0.10.0
libtpu: 0.0.40
codegen_flags: <defaults>
</compile_context>

<pallas_src>
import functools

import jax
import jax.numpy as jnp
from jax.experimental import pallas as pl
from jax.experimental.pallas import tpu as pltpu

HIDDEN = 128  # fixed by the module definition


def generator_kernel(z_ref, w1_ref, b1_ref, w2_ref, b2_ref, o_ref):
    # z_ref:  (TB, noise_dim)          VMEM tile of the batch (stored dtype)
    # w1_ref: (noise_dim, 128)         resident across the grid (f32 or bf16)
    # b1_ref: (1, 128)                 f32
    # w2_ref: (128, n_out)             resident across the grid (f32 or bf16)
    # b2_ref: (1, n_out)               f32
    # o_ref:  (TB, n_out)              out_dtype
    # In-kernel cast of the activation tile to the MXU operand dtype (no-op
    # for the f32 path); bias/ReLU/tanh stay f32 on VPU/EUP.
    x = z_ref[...].astype(w1_ref.dtype)
    h = jnp.dot(x, w1_ref[...], preferred_element_type=jnp.float32)
    h = jnp.maximum(h + b1_ref[...], 0.0)
    y = jnp.dot(h.astype(w2_ref.dtype), w2_ref[...],
                preferred_element_type=jnp.float32)
    o_ref[...] = jnp.tanh(y + b2_ref[...]).astype(o_ref.dtype)


def _round_up(x, m):
    return ((x + m - 1) // m) * m


def init_params(key, noise_dim, output_dim, dtype=jnp.float32):
    """Deterministic PyTorch-style init: U(-1/sqrt(fan_in), 1/sqrt(fan_in))."""
    k1, k2, k3, k4 = jax.random.split(key, 4)
    bnd1 = 1.0 / jnp.sqrt(noise_dim)
    bnd2 = 1.0 / jnp.sqrt(HIDDEN)
    # weights stored [in_features, out_features] (pre-transposed vs torch)
    w1 = jax.random.uniform(k1, (noise_dim, HIDDEN), dtype, -bnd1, bnd1)
    b1 = jax.random.uniform(k2, (1, HIDDEN), dtype, -bnd1, bnd1)
    w2 = jax.random.uniform(k3, (HIDDEN, output_dim), dtype, -bnd2, bnd2)
    b2 = jax.random.uniform(k4, (1, output_dim), dtype, -bnd2, bnd2)
    return w1, b1, w2, b2


def prepare_params(w1, b1, w2, b2, *, compute_dtype=None):
    """One-time weight prep (do this at init, NOT per forward call).

    * Pads W2/b2 columns to a multiple of 128 only when output_dim > 128 and
      not already lane-aligned (keeps full-width vst stores for large outputs
      while avoiding 2x store traffic for small ones like output_dim=64).
    * Casts W1/W2 to the MXU operand dtype (e.g. bf16) once; biases stay f32.
    Returns (w1, b1, w2, b2, output_dim).
    """
    output_dim = w2.shape[1]
    if output_dim > 128:
        pad = -output_dim % 128
        if pad:
            w2 = jnp.pad(w2, ((0, 0), (0, pad)))
            b2 = jnp.pad(b2, ((0, 0), (0, pad)))
    if compute_dtype is not None:
        w1 = w1.astype(compute_dtype)
        w2 = w2.astype(compute_dtype)
    b1 = b1.astype(jnp.float32)
    b2 = b2.astype(jnp.float32)
    return w1, b1, w2, b2, output_dim


def generator_forward(z, params, *, tb=None, out_dtype=None):
    """Fused MLP forward. z: [B, noise_dim] -> [B, output_dim]."""
    w1, b1, w2, b2, output_dim = params
    B, noise_dim = z.shape
    n_out = w2.shape[1]            # possibly lane-padded (>=128 case only)
    if out_dtype is None:
        out_dtype = z.dtype

    z_isz = jnp.dtype(z.dtype).itemsize
    w_isz = jnp.dtype(w1.dtype).itemsize
    o_isz = jnp.dtype(out_dtype).itemsize
    # Sublane alignment of the batch-tile rows (bf16 tiles pack 16 rows).
    row_align = 16 if (z_isz == 2 or o_isz == 2) else 8

    # --- batch tiling --------------------------------------------------------
    if tb is None:
        # Big tiles amortize the ~0.35us/step overhead (v5e/v6e); VMEM-gate the
        # tile so the footprint stays comfortable on v7x (64 MiB physical).
        max_tb = 1024 if n_out <= 256 else 512
        bytes_per_row = (2 * noise_dim * z_isz          # z double-buffer
                         + 2 * n_out * o_isz            # out double-buffer
                         + (HIDDEN + n_out) * 4)        # f32 h / y temporaries
        vmem_budget = 20 << 20
        max_tb = min(max_tb,
                     max(row_align,
                         (vmem_budget // bytes_per_row) // row_align * row_align))
        # >=2 grid steps when there is enough work so both v7x TCs are fed;
        # costs only one extra (~0.35us) step on single-TC chips.
        min_steps = 2 if B >= 2 * row_align else 1
        num_steps = max(min_steps, pl.cdiv(B, max_tb))
        tb = _round_up(pl.cdiv(B, num_steps), row_align)
    else:
        tb = _round_up(tb, row_align)

    b_pad = -B % tb
    if b_pad:
        z = jnp.pad(z, ((0, b_pad), (0, 0)))   # near-even tiles keep this tiny
    Bp = B + b_pad
    grid = (Bp // tb,)

    # --- VMEM limit + scheduler cost hint ------------------------------------
    weight_bytes = ((noise_dim * HIDDEN + HIDDEN * n_out) * w_isz
                    + (HIDDEN + n_out) * 4)
    footprint = (2 * tb * noise_dim * z_isz
                 + 2 * tb * n_out * o_isz
                 + tb * (HIDDEN + n_out) * 4
                 + 2 * weight_bytes)
    vmem_limit = min(64 << 20, max(32 << 20, int(footprint * 1.25) + (2 << 20)))

    cost = pl.CostEstimate(
        flops=2 * Bp * (noise_dim * HIDDEN + HIDDEN * n_out),
        transcendentals=Bp * n_out,
        bytes_accessed=Bp * noise_dim * z_isz + weight_bytes + Bp * n_out * o_isz,
    )

    out = pl.pallas_call(
        generator_kernel,
        out_shape=jax.ShapeDtypeStruct((Bp, n_out), out_dtype),
        grid_spec=pltpu.PrefetchScalarGridSpec(
            num_scalar_prefetch=0,
            grid=grid,
            in_specs=[
                pl.BlockSpec((tb, noise_dim), lambda i: (i, 0)),      # z tile
                pl.BlockSpec((noise_dim, HIDDEN), lambda i: (0, 0)),  # W1 (resident)
                pl.BlockSpec((1, HIDDEN), lambda i: (0, 0)),          # b1
                pl.BlockSpec((HIDDEN, n_out), lambda i: (0, 0)),      # W2 (resident)
                pl.BlockSpec((1, n_out), lambda i: (0, 0)),           # b2
            ],
            out_specs=pl.BlockSpec((tb, n_out), lambda i: (i, 0)),
        ),
        compiler_params=pltpu.CompilerParams(
            dimension_semantics=("parallel",),
            vmem_limit_bytes=vmem_limit,
        ),
        cost_estimate=cost,
    )(z, w1, b1, w2, b2)

    # Strip padding only when it exists (avoids extra XLA copies otherwise).
    if b_pad:
        out = out[:B]
    if n_out != output_dim:
        out = out[:, :output_dim]
    return out


def reference_forward(z, w1, b1, w2, b2):
    h = jnp.maximum(z @ w1 + b1, 0.0)
    return jnp.tanh(h @ w2 + b2)


if __name__ == "__main__":
    noise_dim = 32
    output_dim = 64
    batch = 16

    key = jax.random.PRNGKey(0)
    kz, kp = jax.random.split(key)
    z = jax.random.normal(kz, (batch, noise_dim), jnp.float32)
    w1, b1, w2, b2 = init_params(kp, noise_dim, output_dim)
    ref = reference_forward(z, w1, b1, w2, b2)

    # f32 path (strict tolerance); output_dim=64 stays unpadded (masked vst).
    params_f32 = prepare_params(w1, b1, w2, b2)
    out = jax.block_until_ready(generator_forward(z, params_f32))
    assert out.shape == (batch, output_dim)
    assert jnp.allclose(out, ref, atol=1e-5, rtol=1e-5)

    # bf16 MXU-operand path (v5e/v6e/v7x), weights cast once at prep time,
    # z cast in-kernel, f32 accumulation -> loose tolerance.
    params_bf16 = prepare_params(w1, b1, w2, b2, compute_dtype=jnp.bfloat16)
    out_bf16 = jax.block_until_ready(generator_forward(z, params_bf16))
    assert out_bf16.shape == (batch, output_dim)
    assert jnp.allclose(out_bf16, ref, atol=3e-2, rtol=3e-2)

    # Ragged batch (not a multiple of the tile / sublane count).
    z_odd = jax.random.normal(kz, (batch + 3, noise_dim), jnp.float32)
    out_odd = jax.block_until_ready(generator_forward(z_odd, params_f32))
    ref_odd = reference_forward(z_odd, w1, b1, w2, b2)
    assert out_odd.shape == (batch + 3, output_dim)
    assert jnp.allclose(out_odd, ref_odd, atol=1e-5, rtol=1e-5)

    # Large non-lane-aligned output_dim: exercises the one-time column padding
    # path (200 -> 256) and the trailing column slice.
    out_dim_big = 200
    w1b, b1b, w2b, b2b = init_params(kp, noise_dim, out_dim_big)
    params_big = prepare_params(w1b, b1b, w2b, b2b)
    z_big = jax.random.normal(kz, (24, noise_dim), jnp.float32)
    out_big = jax.block_until_ready(generator_forward(z_big, params_big))
    ref_big = reference_forward(z_big, w1b, b1b, w2b, b2b)
    assert out_big.shape == (24, out_dim_big)
    assert jnp.allclose(out_big, ref_big, atol=1e-5, rtol=1e-5)

    print("KERNEL_OK")
</pallas_src>

<mosaic_0001>
module attributes {stable_mosaic.version = 11 : i64} {
  func.func @generator_kernel(%arg0: i32, %arg1: memref<8x32xf32, #tpu.memory_space<vmem>>, %arg2: memref<32x128xf32, #tpu.memory_space<vmem>>, %arg3: memref<1x128xf32, #tpu.memory_space<vmem>>, %arg4: memref<128x64xf32, #tpu.memory_space<vmem>>, %arg5: memref<1x64xf32, #tpu.memory_space<vmem>>, %arg6: memref<8x64xf32, #tpu.memory_space<vmem>>) attributes {dimension_semantics = [#tpu.dimension_semantics<parallel>], iteration_bounds = array<i64: 2>, scalar_prefetch = 0 : i64, scratch_operands = 0 : i64, tpu.core_type = #tpu.core_type<tc>, window_params = [{transform_indices = @transform_0, window_bounds = array<i64: 8, 32>}, {pipeline_mode = #tpu.pipeline_mode<synchronous>, transform_indices = @transform_1, window_bounds = array<i64: 32, 128>}, {pipeline_mode = #tpu.pipeline_mode<synchronous>, transform_indices = @transform_2, window_bounds = array<i64: 1, 128>}, {pipeline_mode = #tpu.pipeline_mode<synchronous>, transform_indices = @transform_3, window_bounds = array<i64: 128, 64>}, {pipeline_mode = #tpu.pipeline_mode<synchronous>, transform_indices = @transform_4, window_bounds = array<i64: 1, 64>}, {transform_indices = @transform_5, window_bounds = array<i64: 8, 64>}]} {
    %c0 = arith.constant 0 : index
    %c0_0 = arith.constant 0 : index
    %0 = vector.load %arg1[%c0, %c0_0] : memref<8x32xf32, #tpu.memory_space<vmem>>, vector<8x32xf32>
    %c0_1 = arith.constant 0 : index
    %c0_2 = arith.constant 0 : index
    %1 = vector.load %arg2[%c0_1, %c0_2] : memref<32x128xf32, #tpu.memory_space<vmem>>, vector<32x128xf32>
    %cst = arith.constant dense<0.000000e+00> : vector<8x128xf32>
    %2 = tpu.matmul %0, %1, %cst {dimension_numbers = #tpu.dot_dimension_numbers<[1], [0], [0], [1], [0, 0, 1, 1], [], []>} : vector<8x32xf32>, vector<32x128xf32>, vector<8x128xf32> -> vector<8x128xf32>
    %c0_3 = arith.constant 0 : index
    %c0_4 = arith.constant 0 : index
    %3 = vector.load %arg3[%c0_3, %c0_4] : memref<1x128xf32, #tpu.memory_space<vmem>>, vector<1x128xf32>
    %4 = vector.broadcast %3 : vector<1x128xf32> to vector<8x128xf32>
    %5 = arith.addf %2, %4 : vector<8x128xf32>
    %cst_5 = arith.constant 0.000000e+00 : f32
    %6 = vector.broadcast %cst_5 : f32 to vector<8x128xf32>
    %7 = arith.maximumf %5, %6 : vector<8x128xf32>
    %c0_6 = arith.constant 0 : index
    %c0_7 = arith.constant 0 : index
    %8 = vector.load %arg4[%c0_6, %c0_7] : memref<128x64xf32, #tpu.memory_space<vmem>>, vector<128x64xf32>
    %cst_8 = arith.constant dense<0.000000e+00> : vector<8x64xf32>
    %9 = tpu.matmul %7, %8, %cst_8 {dimension_numbers = #tpu.dot_dimension_numbers<[1], [0], [0], [1], [0, 0, 1, 1], [], []>} : vector<8x128xf32>, vector<128x64xf32>, vector<8x64xf32> -> vector<8x64xf32>
    %c0_9 = arith.constant 0 : index
    %c0_10 = arith.constant 0 : index
    %10 = vector.load %arg5[%c0_9, %c0_10] : memref<1x64xf32, #tpu.memory_space<vmem>>, vector<1x64xf32>
    %11 = vector.broadcast %10 : vector<1x64xf32> to vector<8x64xf32>
    %12 = arith.addf %9, %11 : vector<8x64xf32>
    %13 = math.tanh %12 : vector<8x64xf32>
    %c0_11 = arith.constant 0 : index
    %c0_12 = arith.constant 0 : index
    %14 = vector.load %arg6[%c0_11, %c0_12] : memref<8x64xf32, #tpu.memory_space<vmem>>, vector<8x64xf32>
    tpu.vector_store %arg6[%c0_11, %c0_12], %13 {strides = array<i32>} : memref<8x64xf32, #tpu.memory_space<vmem>>, vector<8x64xf32>,
    return
  }
  func.func @transform_0(%arg0: i32) -> (i32, i32) {
    %c0_i32 = arith.constant 0 : i32
    %c0_i32_0 = arith.constant 0 : i32
    return %arg0, %c0_i32 : i32, i32
  }
  func.func @transform_1(%arg0: i32) -> (i32, i32) {
    %c0_i32 = arith.constant 0 : i32
    %c0_i32_0 = arith.constant 0 : i32
    %c0_i32_1 = arith.constant 0 : i32
    return %c0_i32, %c0_i32_0 : i32, i32
  }
  func.func @transform_2(%arg0: i32) -> (i32, i32) {
    %c0_i32 = arith.constant 0 : i32
    %c0_i32_0 = arith.constant 0 : i32
    %c0_i32_1 = arith.constant 0 : i32
    return %c0_i32, %c0_i32_0 : i32, i32
  }
  func.func @transform_3(%arg0: i32) -> (i32, i32) {
    %c0_i32 = arith.constant 0 : i32
    %c0_i32_0 = arith.constant 0 : i32
    %c0_i32_1 = arith.constant 0 : i32
    return %c0_i32, %c0_i32_0 : i32, i32
  }
  func.func @transform_4(%arg0: i32) -> (i32, i32) {
    %c0_i32 = arith.constant 0 : i32
    %c0_i32_0 = arith.constant 0 : i32
    %c0_i32_1 = arith.constant 0 : i32
    return %c0_i32, %c0_i32_0 : i32, i32
  }
  func.func @transform_5(%arg0: i32) -> (i32, i32) {
    %c0_i32 = arith.constant 0 : i32
    %c0_i32_0 = arith.constant 0 : i32
    return %arg0, %c0_i32 : i32, i32
  }
}

</mosaic_0001>

<bundles_post_ra>
// kernel: tpu_custom_call.1
= control target key start
LH: loop header
LB: loop body
LE: loop exit
PB: predicated region body
PF: predicated region fallthrough
CT: control target
= control target key end

     0   :  { %10 = vsyncpa [#allocation3], 0  ;;  %s895_s0 = inlined_call_operand.vmem [shape: f32[16,32], index: 0, kind: input, shape index: {}]   ;;  %s896_s1 = inlined_call_operand.vmem [shape: f32[32,128], index: 1, kind: input, shape index: {}]   ;;  %s897_s2 = inlined_call_operand.vmem [shape: f32[1,128], index: 2, kind: input, shape index: {}]   ;;  %s898_s3 = inlined_call_operand.vmem [shape: f32[128,64], index: 3, kind: input, shape index: {}]   ;;  %s899_s4 = inlined_call_operand.vmem [shape: f32[1,64], index: 4, kind: input, shape index: {}]   ;;  %s900_s5 = inlined_call_operand.hbm [shape: f32[16,64], index: 5, kind: output, shape index: {}]  }
   0x1   :  { %12 = vsyncpa [#allocation3 + $0x1], 0  ;;  %s729_s18 = smov 0   ;;  %s731_s19 = smov 0  }
   0x2   :  { %s733_s20 = smov 0   ;;  %s735_s21 = smov 0  }
   0x3 LB: > { %s750_s22 = sadd.s32 4294967295, %s693_s21   ;;  %s476_s23 = sadd.s32 4294967294, %s693_s21   ;;  %s693_s21 = sphi %s735_s21, %s906_s21   ;;  %s689_s20 = sphi %s733_s20, %s905_s20   ;;  %s685_s19 = sphi %s731_s19, %s904_s19   ;;  %s681_s18 = sphi %s729_s18, %s903_s18  }
   0x4   : > { %s754_s24 = sadd.s32 1, %s693_s21   ;;  %s135_s25 = sadd.s32 1, %s689_s20 }
   0x5   : > { %s132_s26 = ssub.s32 %s693_s21, %s754_s24  ;;  %p145_p0 = scmp.ne.s32.totalorder %s689_s20, %s685_s19 }
   0x6   : > { %p133_p1 = scmp.eq.s32.totalorder %s132_s26, 0  ;;  %p146_p2 = scmp.eq.s32.totalorder %s750_s22, 1 }
   0x7   : > { %p151_p3 = scmp.ne.s32.totalorder %s685_s19, %s681_s18  ;;  %p152_p4 = scmp.eq.s32.totalorder %s476_s23, 1 }
   0x8   : > { %s765_s27 = scalar_select %p133_p1, %s689_s20, %s135_s25  }
   0x9   : > { %p767_p5 = por %p146_p2, %p145_p0  ;;  %p771_p6 = por %p152_p4, %p151_p3 }
   0xa   : > { %p479_p7 = scmp.ge.s32.totalorder %s693_s21, 1  ;;  %p189_p8 = scmp.lt.s32.totalorder %s693_s21, 3 }
   0xc   : > { %p190_p9 = pnand %p479_p7, %p189_p8 }
   0xd   : > { %v221_v0 = vld [vmem:[%s896_s1] sm:$0xff] (!%p190_p9)  ;;  %v222_v1 = vld [vmem:[%s896_s1 + $0x8] sm:$0xff] (!%p190_p9)  ;;  %v223_v2 = vld [vmem:[%s896_s1 + $0x10] sm:$0xff] (!%p190_p9)  ;;  %v695_v3 = vmov (!%p190_p9), 0.0|0.0   ;;  %vm696_vm0 = vmmov (!%p190_p9), 0   ;;  %v697_v6 = vmov (!%p190_p9), 0.0  }
   0xe   : > { %193 = sbr.rel (%p190_p9) target bundleno = 481 (0x1e1), region = 40  ;;  %557 = vmatprep.subr.bf16.mxu0 (!%p190_p9), %v695_v3  ;;  %v558_v4 = vpack.c.bf16 (!%p190_p9), %v222_v1, %v221_v0  ;;  %v224_v5 = vld [vmem:[%s896_s1 + $0x18] sm:$0xff] (!%p190_p9)  ;;  %519 = vmatprep.mubr.msk.f32.mxu0 (!%p190_p9), %vm696_vm0, %v697_v6  ;;  %p216_p10 = scmp.lt.s32.totalorder (!%p190_p9), %s750_s22, 1  ;;  %v307_v7 = vld [vmem:[%s898_s3] sm:$0xff] (!%p190_p9)  ;;  %v308_v8 = vld [vmem:[%s898_s3 + $0x8] sm:$0xff] (!%p190_p9)  ;;  %vm232_vm1 = vcmask (!%p190_p9), 261120  }
   0xf   : > { %563 = vmatprep.subr.bf16.mxu1 (!%p190_p9), %v695_v3  ;;  %v564_v9 = vpack.c.bf16 (!%p190_p9), %v308_v8, %v307_v7  ;;  %v309_v10 = vld [vmem:[%s898_s3 + $0x10] sm:$0xff] (!%p190_p9)  ;;  %v310_v11 = vld [vmem:[%s898_s3 + $0x18] sm:$0xff] (!%p190_p9)  ;;  %554 = vmatprep.mubr.msk.f32.mxu1 (!%p190_p9), %vm696_vm0, %v697_v6  ;;  %v561_v12 = vpack.c.bf16 (!%p190_p9), %v224_v5, %v223_v2  ;;  %v311_v14 = vld [vmem:[%s898_s3 + $0x20] sm:$0xff] (!%p190_p9)  ;;  %s486_s8 = sshll.u32 (!%p190_p9), %s750_s22, 7  ;;  %vm401_vm2 = vcmask (!%p190_p9), 523264  }
  0x10   : > { %559 = vmatpush3.bf16.msra.mxu0 (!%p190_p9), %v558_v4  ;;  %v567_v13 = vpack.c.bf16 (!%p190_p9), %v310_v11, %v309_v10  ;;  %v312_v15 = vld [vmem:[%s898_s3 + $0x28] sm:$0xff] (!%p190_p9)  ;;  %v313_v18 = vld [vmem:[%s898_s3 + $0x30] sm:$0xff] (!%p190_p9)  ;;  %v314_v19 = vld [vmem:[%s898_s3 + $0x38] sm:$0xff] (!%p190_p9) }
  0x11   : > { %560 = vmatprep.subr.bf16.mxu0 (!%p190_p9), %v695_v3  ;;  %565 = vmatpush3.bf16.msra.mxu1 (!%p190_p9), %v564_v9  ;;  %v570_v17 = vpack.c.bf16 (!%p190_p9), %v312_v15, %v311_v14  ;;  %v573_v20 = vpack.c.bf16 (!%p190_p9), %v314_v19, %v313_v18  ;;  %v315_v21 = vld [vmem:[%s898_s3 + $0x40] sm:$0xff] (!%p190_p9)  ;;  %v316_v22 = vld [vmem:[%s898_s3 + $0x48] sm:$0xff] (!%p190_p9)  ;;  %v317_v24 = vld [vmem:[%s898_s3 + $0x50] sm:$0xff] (!%p190_p9) }
  0x12   : > { %566 = vmatprep.subr.bf16.mxu1 (!%p190_p9), %v695_v3  ;;  %v576_v23 = vpack.c.bf16 (!%p190_p9), %v316_v22, %v315_v21  ;;  %v318_v25 = vld [vmem:[%s898_s3 + $0x58] sm:$0xff] (!%p190_p9)  ;;  %v319_v27 = vld [vmem:[%s898_s3 + $0x60] sm:$0xff] (!%p190_p9)  ;;  %v320_v28 = vld [vmem:[%s898_s3 + $0x68] sm:$0xff] (!%p190_p9) }
  0x13   : > { %v579_v26 = vpack.c.bf16 (!%p190_p9), %v318_v25, %v317_v24  ;;  %v582_v29 = vpack.c.bf16 (!%p190_p9), %v320_v28, %v319_v27  ;;  %v321_v30 = vld [vmem:[%s898_s3 + $0x70] sm:$0xff] (!%p190_p9)  ;;  %v322_v31 = vld [vmem:[%s898_s3 + $0x78] sm:$0xff] (!%p190_p9)  ;;  %v482_v33 = vld [vmem:[%s897_s2] ss:$0 sm:$0xff] (!%p190_p9) }
  0x14   : > { %562 = vmatpush3.bf16.msra.mxu0 (!%p190_p9), %v561_v12  ;;  %v585_v32 = vpack.c.bf16 (!%p190_p9), %v322_v31, %v321_v30  ;;  %v484_v38 = vld [vmem:[%s899_s4] ss:$0 sm:$0xff] (!%p190_p9) }
  0x15   : > { %s217_s30 = scalar_select %p216_p10, %s750_s22, 1  ;;  %568 = vmatpush3.bf16.msra.mxu1 %v567_v13 }
  0x16   : > { %569 = vmatprep.subr.bf16.mxu1 %v695_v3  ;;  %s698_s22 = smov [#allocation2]  }
  0x17   : > { %s481_s6 = sshll.u32 %s217_s30, 3  ;;  %s635_s16 = sshll.u32 %s698_s22, 4  ;;  %s636_s16 = int_to_ptr.vmem [resolvable:$false] %s635_s16 }
  0x18   : > { %s219_s13 = scalar_lea.vmem %s895_s0, %s481_s6  ;;  %s213_s6 = sand.u32 1, %s685_s19  }
  0x19   : > { %v220_v16 = vld [vmem:[%s219_s13] sm:$0xff]  ;;  %571 = vmatpush3.bf16.msra.mxu1 %v570_v17  ;;  %s480_s7 = sshll.u32 %s213_s6, 3  ;;  %s853_s13 = scalar_lea.hbm %s900_s5, %s486_s8 }
  0x1a   : > { %520 = vmatmul.mubr.msk.f32.vlgmr.msra.gmra.mrb[0].mxu0 %vm232_vm1, %v220_v16  ;;  %572 = vmatprep.subr.bf16.mxu1 %v695_v3  ;;  %s215_s9 = scalar_lea.vmem [#allocation2], %s480_s7  ;;  %s404_s14 = scalar_lea.sflag [#allocation3], %s213_s6 }
  0x1b   : > { %s417_s10 = sshll.u32 %s215_s9, 4  ;;  %s637_s17 = scalar_lea.vmem %s636_s16, 256  ;;  %s855_s10 = int_to_ptr.vmem [resolvable:$true] %s417_s10 }
  0x1c   : > { %s631_s15 = scalar_lea.vmem %s855_s10, 128  ;;  %p638_p0 = scmp.lt.s32.totalorder %s855_s10, %s636_s16 }
  0x1d   : > { %574 = vmatpush3.bf16.msra.mxu1 %v573_v20  ;;  %p632_p11 = scmp.ne.s32.totalorder %s855_s10, %s631_s15  ;;  %p639_p1 = scmp.lt.s32.totalorder %s637_s17, %s631_s15 }
  0x1e   : > { %575 = vmatprep.subr.bf16.mxu1 %v695_v3 }
  0x1f   : > { %p633_p12 = pnand %p632_p11, %p767_p5  ;;  %p640_p2 = por %p639_p1, %p638_p0 }
  0x21   : > { %577 = vmatpush3.bf16.msra.mxu1 %v576_v23  ;;  %p634_p13 = pneg %p633_p12 }
  0x22   : > { %578 = vmatprep.subr.bf16.mxu1 %v695_v3 }
  0x23   : > { %p641_p3 = pnand %p640_p2, %p634_p13 }
  0x25   : > { %580 = vmatpush3.bf16.msra.mxu1 %v579_v26 }
  0x26   : > { %581 = vmatprep.subr.bf16.mxu1 %v695_v3 }
  0x29   : > { %583 = vmatpush3.bf16.msra.mxu1 %v582_v29 }
  0x2a   : > { %584 = vmatprep.subr.bf16.mxu1 %v695_v3 }
  0x2d   : > { %586 = vmatpush3.bf16.msra.mxu1 %v585_v32 }
  0xed   : > { %v302_v34 = vpop.f32.mrb[0].mxu0 }
  0xee   : > { %v303_v35 = vadd.f32 %v482_v33, %v302_v34  ;;  %v521_v36 = vpop.f32.mrb[1].mxu0 }
  0xf0   : > { %v306_v37 = vmax.f32 %v303_v35, 0.0 }
  0xf2   : > { %555 = vmatmul.mubr.f32.vlgmr.msra.gmra.mrb[0].mxu1 %v306_v37 }
 0x1c5   : > { %v396_v39 = vpop.f32.mrb[0].mxu1 }
 0x1c6   : > { %v397_v40 = vadd.f32 %v484_v38, %v396_v39  ;;  %v556_v41 = vpop.f32.mrb[1].mxu1 }
 0x1c8   : > { %629 = vtanh.f32 %v397_v40 }
 0x1d2   : > { %v630_v42 = vpop.eup %629 }
 0x1d3   : > { %402 = vst.msk [vmem:[%s215_s9] sm:$0xff] %vm401_vm2, %v630_v42 }
 0x1d4   : > { %644 = shalt.err (!%p641_p3)
}
 0x1d5   : > { %s645_s23 = scalar_lea.hbm %s853_s13, 128  ;;  %s649_s30 = scalar_lea.hbm %s900_s5, 256 }
 0x1d6   : > { %p646_p4 = scmp.ne.s32.totalorder %s853_s13, %s645_s23  ;;  %p650_p9 = scmp.lt.u32.totalorder %s853_s13, %s900_s5 }
 0x1d7   : > { %p651_p10 = scmp.lt.u32.totalorder %s649_s30, %s645_s23  ;;  %p653_p12 = scmp.lt.u32.totalorder %s645_s23, %s853_s13 }
 0x1d8   : > { %p647_p7 = pnand %p646_p4, %p767_p5 }
 0x1d9   : > { %p652_p11 = por %p651_p10, %p650_p9 }
 0x1da   : > { %p648_p8 = pneg %p647_p7 }
 0x1db   : > { %p654_p13 = por %p653_p12, %p652_p11 }
 0x1dd   : > { %p655_p0 = pnand %p654_p13, %p648_p8 }
 0x1df   : > { %658 = shalt.err (!%p655_p0)
}
 0x1e0   : > { %587 = dma.vmem_to_hbm [thread:$0]  (%p767_p5), %s855_s10, 128, %s853_s13, %s404_s14  }
 0x1e1 PF: > { %p593_p1 = scmp.ge.s32.totalorder %s693_s21, 2  ;;  %s429_s8 = sand.u32 1, %s681_s18  }
 0x1e2   : > { %s430_s9 = scalar_lea.sflag [#allocation3], %s429_s8 }
 0x1e3   : > { %p590_p2 = pnand %p593_p1, %p771_p6 }
 0x1e5   : > { %676 = dma.done.wait (!%p590_p2), %s430_s9, 128  }
 0x1e6   : > { %678 = vsyncadd (!%p590_p2), %s430_s9, 4294967168  ;;  %p15_p3 = scmp.ge.s32.totalorder %s754_s24, 4   ;;  %s903_s18 = smov %s685_s19 }
 0x1e7   : > { %s904_s19 = smov %s689_s20  ;;  %s905_s20 = smov %s765_s27 }
 0x1e8   : > { %s906_s21 = smov %s754_s24  ;;  %17 = sbr.rel (!%p15_p3) target bundleno = 3 (0x3), region = 75 }
 0x1ef   :  { %435 = vsyncpa [#allocation3], 1 }
 0x1f0   :  { %437 = vsyncpa [#allocation3 + $0x1], 1 }

</bundles_post_ra>
